<compile_context>
chip_gen: v5e
topology: v5e:2x2
jax: 0.10.0
libtpu: 0.0.40
codegen_flags: <defaults>
</compile_context>

<pallas_src>
import jax
import jax.numpy as jnp
from jax.experimental import pallas as pl
from jax.experimental.pallas import tpu as pltpu

LANE = 128
SUBLANE = 8
DESIRED_ROW_TILE = 2048  # 1 MiB per f32 block; sweepable 1024-4096


def _make_kernel(total_elems, m_rows, row_tile, tiles_per_shard, alpha, need_mask):
    inv_n = 1.0 / float(total_elems)
    a = float(alpha)

    def kernel(y_ref, z_ref, out_ref):
        i = pl.program_id(0)  # shard (TensorCore) index
        j = pl.program_id(1)  # tile index within the shard
        n_j = pl.num_programs(1)

        @pl.when(j == 0)
        def _():
            out_ref[...] = jnp.zeros_like(out_ref)

        # Cast in-kernel so sub-f32 inputs (e.g. bf16) DMA at native width.
        d = y_ref[...].astype(jnp.float32) - z_ref[...].astype(jnp.float32)
        da = d * a
        # max((y-z)*a, (z-y)*(1-a)) == max(d*a, d*a - d)
        loss = jnp.maximum(da, da - d)

        if need_mask:
            # Zero rows past the valid extent (ragged last tile / shard
            # overshoot). Trace-time gated: aligned configs pay nothing.
            row_start = (i * tiles_per_shard + j) * row_tile
            rows = row_start + jax.lax.broadcasted_iota(
                jnp.int32, (row_tile, LANE), 0
            )
            loss = jnp.where(rows < m_rows, loss, 0.0)

        if row_tile % SUBLANE == 0:
            # Vreg-shaped partial accumulation: pure VPU adds, no XLU reduce
            # inside the loop.
            out_ref[...] += loss.reshape(
                row_tile // SUBLANE, SUBLANE, LANE
            ).sum(axis=0)
        else:
            # Tiny-input fallback (row_tile == full M < 8-aligned): single tile,
            # scalar accumulate is fine.
            out_ref[0, 0] += jnp.sum(loss)

        @pl.when(j == n_j - 1)
        def _():
            out_ref[...] = out_ref[...] * inv_n

    return kernel


def pinball_loss(y, z, alpha):
    """Mean pinball loss over all elements of y/z (same shape)."""
    assert y.shape == z.shape
    total = y.size
    if total == 0:
        return jnp.float32(jnp.nan)

    y_flat = y.reshape(-1)
    z_flat = z.reshape(-1)

    # Only pad when the element count is not lane-aligned (<=127 zeros);
    # padded pairs are equal so they contribute exactly 0 to the sum.
    pad = (-total) % LANE
    if pad:
        y_flat = jnp.concatenate([y_flat, jnp.zeros((pad,), y_flat.dtype)])
        z_flat = jnp.concatenate([z_flat, jnp.zeros((pad,), z_flat.dtype)])

    m = y_flat.size // LANE
    y2 = y_flat.reshape(m, LANE)
    z2 = z_flat.reshape(m, LANE)

    # Block of full extent when small (always legal), otherwise 2048 rows.
    row_tile = m if m <= DESIRED_ROW_TILE else DESIRED_ROW_TILE
    n_tiles = pl.cdiv(m, row_tile)
    num_shards = 2 if n_tiles >= 2 else 1  # split across TCs on v7x
    tiles_per_shard = pl.cdiv(n_tiles, num_shards)

    need_mask = (m % row_tile != 0) or (n_tiles % num_shards != 0)

    kernel = _make_kernel(total, m, row_tile, tiles_per_shard, alpha, need_mask)

    def in_map(i, j):
        # Clamp so overshoot tiles (odd tile counts with 2 shards) never
        # request a block starting past the array; their rows are masked.
        t = jnp.minimum(i * tiles_per_shard + j, n_tiles - 1)
        return (t, 0)

    partials = pl.pallas_call(
        kernel,
        out_shape=jax.ShapeDtypeStruct((num_shards * SUBLANE, LANE), jnp.float32),
        grid_spec=pltpu.PrefetchScalarGridSpec(
            num_scalar_prefetch=0,
            grid=(num_shards, tiles_per_shard),
            in_specs=[
                pl.BlockSpec((row_tile, LANE), in_map),
                pl.BlockSpec((row_tile, LANE), in_map),
            ],
            out_specs=pl.BlockSpec((SUBLANE, LANE), lambda i, j: (i, 0)),
        ),
        compiler_params=pltpu.CompilerParams(
            dimension_semantics=("parallel", "arbitrary"),
        ),
    )(y2, z2)

    # Tiny final cross-lane reduce over the (num_shards*8, 128) partials.
    return jnp.sum(partials)


def _ref_loss(y, z, alpha):
    return jnp.mean(jnp.maximum((y - z) * alpha, (z - y) * (1.0 - alpha)))


if __name__ == "__main__":
    key = jax.random.PRNGKey(0)
    alpha = 0.3  # module hyperparameter (PinballLoss(alpha))

    # Primary small NCHW example.
    k1, k2 = jax.random.split(key)
    y = jax.random.normal(k1, (2, 4, 16, 16), dtype=jnp.float32)
    z = jax.random.normal(k2, (2, 4, 16, 16), dtype=jnp.float32)
    loss = pinball_loss(y, z, alpha)
    jax.block_until_ready(loss)
    ref = _ref_loss(y, z, alpha)
    assert jnp.allclose(loss, ref, rtol=1e-5, atol=1e-6), (loss, ref)

    # Extra coverage: non-lane-aligned element count (pad + scalar-accum path).
    k3, k4 = jax.random.split(k2)
    y2 = jax.random.normal(k3, (3, 5, 7, 11), dtype=jnp.float32)
    z2 = jax.random.normal(k4, (3, 5, 7, 11), dtype=jnp.float32)
    l2 = pinball_loss(y2, z2, alpha)
    jax.block_until_ready(l2)
    assert jnp.allclose(l2, _ref_loss(y2, z2, alpha), rtol=1e-5, atol=1e-6)

    # Extra coverage: multi-tile, 2-shard, ragged last tile (mask path).
    k5, k6 = jax.random.split(k4)
    y3 = jax.random.normal(k5, (2, 9, 64, 256), dtype=jnp.float32)
    z3 = jax.random.normal(k6, (2, 9, 64, 256), dtype=jnp.float32)
    l3 = pinball_loss(y3, z3, alpha)
    jax.block_until_ready(l3)
    assert jnp.allclose(l3, _ref_loss(y3, z3, alpha), rtol=1e-5, atol=1e-6)

    print("KERNEL_OK")
</pallas_src>

<mosaic_0001>
module attributes {stable_mosaic.version = 11 : i64} {
  func.func @kernel(%arg0: i32, %arg1: i32, %arg2: memref<16x128xf32, #tpu.memory_space<vmem>>, %arg3: memref<16x128xf32, #tpu.memory_space<vmem>>, %arg4: memref<8x128xf32, #tpu.memory_space<vmem>>) attributes {dimension_semantics = [#tpu.dimension_semantics<parallel>, #tpu.dimension_semantics<arbitrary>], iteration_bounds = array<i64: 1, 1>, scalar_prefetch = 0 : i64, scratch_operands = 0 : i64, tpu.core_type = #tpu.core_type<tc>, window_params = [{transform_indices = @transform_0, window_bounds = array<i64: 16, 128>}, {transform_indices = @transform_1, window_bounds = array<i64: 16, 128>}, {transform_indices = @transform_2, window_bounds = array<i64: 8, 128>}]} {
    %c0_i32 = arith.constant 0 : i32
    %0 = arith.cmpi eq, %arg1, %c0_i32 : i32
    %1 = arith.extui %0 : i1 to i32
    %c0_i32_0 = arith.constant 0 : i32
    %2 = arith.cmpi ne, %1, %c0_i32_0 : i32
    scf.if %2 {
      %cst_11 = arith.constant 0.000000e+00 : f32
      %18 = vector.broadcast %cst_11 : f32 to vector<8x128xf32>
      %c0_12 = arith.constant 0 : index
      %c0_13 = arith.constant 0 : index
      %19 = vector.load %arg4[%c0_12, %c0_13] : memref<8x128xf32, #tpu.memory_space<vmem>>, vector<8x128xf32>
      tpu.vector_store %arg4[%c0_12, %c0_13], %18 {strides = array<i32>} : memref<8x128xf32, #tpu.memory_space<vmem>>, vector<8x128xf32>,
    } else {
    }
    %c0 = arith.constant 0 : index
    %c0_1 = arith.constant 0 : index
    %3 = vector.load %arg2[%c0, %c0_1] : memref<16x128xf32, #tpu.memory_space<vmem>>, vector<16x128xf32>
    %c0_2 = arith.constant 0 : index
    %c0_3 = arith.constant 0 : index
    %4 = vector.load %arg3[%c0_2, %c0_3] : memref<16x128xf32, #tpu.memory_space<vmem>>, vector<16x128xf32>
    %5 = arith.subf %3, %4 : vector<16x128xf32>
    %cst = arith.constant 3.000000e-01 : f32
    %6 = vector.broadcast %cst : f32 to vector<16x128xf32>
    %7 = arith.mulf %5, %6 : vector<16x128xf32>
    %8 = arith.subf %7, %5 : vector<16x128xf32>
    %9 = arith.maximumf %7, %8 : vector<16x128xf32>
    %c0_4 = arith.constant 0 : index
    %c0_5 = arith.constant 0 : index
    %10 = vector.load %arg4[%c0_4, %c0_5] : memref<8x128xf32, #tpu.memory_space<vmem>>, vector<8x128xf32>
    %11 = vector.shape_cast %9 : vector<16x128xf32> to vector<2x8x128xf32>
    %cst_6 = arith.constant dense<0.000000e+00> : vector<8x128xf32>
    %12 = vector.multi_reduction <add>, %11, %cst_6 [0] : vector<2x8x128xf32> to vector<8x128xf32>
    %13 = arith.addf %10, %12 : vector<8x128xf32>
    %c0_7 = arith.constant 0 : index
    %c0_8 = arith.constant 0 : index
    %14 = vector.load %arg4[%c0_7, %c0_8] : memref<8x128xf32, #tpu.memory_space<vmem>>, vector<8x128xf32>
    tpu.vector_store %arg4[%c0_7, %c0_8], %13 {strides = array<i32>} : memref<8x128xf32, #tpu.memory_space<vmem>>, vector<8x128xf32>,
    %c0_i32_9 = arith.constant 0 : i32
    %15 = arith.cmpi eq, %arg1, %c0_i32_9 : i32
    %16 = arith.extui %15 : i1 to i32
    %c0_i32_10 = arith.constant 0 : i32
    %17 = arith.cmpi ne, %16, %c0_i32_10 : i32
    scf.if %17 {
      %c0_11 = arith.constant 0 : index
      %c0_12 = arith.constant 0 : index
      %18 = vector.load %arg4[%c0_11, %c0_12] : memref<8x128xf32, #tpu.memory_space<vmem>>, vector<8x128xf32>
      %cst_13 = arith.constant 4.8828125E-4 : f32
      %19 = vector.broadcast %cst_13 : f32 to vector<8x128xf32>
      %20 = arith.mulf %18, %19 : vector<8x128xf32>
      %c0_14 = arith.constant 0 : index
      %c0_15 = arith.constant 0 : index
      %21 = vector.load %arg4[%c0_14, %c0_15] : memref<8x128xf32, #tpu.memory_space<vmem>>, vector<8x128xf32>
      tpu.vector_store %arg4[%c0_14, %c0_15], %20 {strides = array<i32>} : memref<8x128xf32, #tpu.memory_space<vmem>>, vector<8x128xf32>,
    } else {
    }
    return
  }
  func.func @transform_0(%arg0: i32, %arg1: i32) -> (i32, i32) {
    %c1_i32 = arith.constant 1 : i32
    %0 = arith.muli %arg0, %c1_i32 : i32
    %1 = arith.addi %0, %arg1 : i32
    %c0_i32 = arith.constant 0 : i32
    %2 = arith.minsi %1, %c0_i32 : i32
    %c0_i32_0 = arith.constant 0 : i32
    %c0_i32_1 = arith.constant 0 : i32
    return %2, %c0_i32_0 : i32, i32
  }
  func.func @transform_1(%arg0: i32, %arg1: i32) -> (i32, i32) {
    %c1_i32 = arith.constant 1 : i32
    %0 = arith.muli %arg0, %c1_i32 : i32
    %1 = arith.addi %0, %arg1 : i32
    %c0_i32 = arith.constant 0 : i32
    %2 = arith.minsi %1, %c0_i32 : i32
    %c0_i32_0 = arith.constant 0 : i32
    %c0_i32_1 = arith.constant 0 : i32
    return %2, %c0_i32_0 : i32, i32
  }
  func.func @transform_2(%arg0: i32, %arg1: i32) -> (i32, i32) {
    %c0_i32 = arith.constant 0 : i32
    %c0_i32_0 = arith.constant 0 : i32
    return %arg0, %c0_i32 : i32, i32
  }
}

</mosaic_0001>

<bundles_post_ra>
// kernel: tpu_custom_call.1
= control target key start
LH: loop header
LB: loop body
LE: loop exit
PB: predicated region body
PF: predicated region fallthrough
CT: control target
= control target key end

     0   :  { %7 = vsyncpa [#allocation3], 0  ;;  %s226_s0 = inlined_call_operand.hbm [shape: f32[16,128], index: 0, kind: input, shape index: {}]   ;;  %s227_s1 = inlined_call_operand.hbm [shape: f32[16,128], index: 1, kind: input, shape index: {}]   ;;  %s228_s2 = inlined_call_operand.hbm [shape: f32[8,128], index: 2, kind: output, shape index: {}]  }
   0x1   :  { %8 = vsyncpa [#allocation6], 0 }
   0x2   :  { %9 = vsyncpa [#allocation4], 0  ;;  %s20_s11 = sshll.u32 %s226_s0, 4  ;;  %s197_s12 = smov [#allocation2]   ;;  %s21_s11 = int_to_ptr.hbm [resolvable:$true] %s20_s11 }
   0x3   :  { %s22_s13 = sshll.u32 %s197_s12, 4  ;;  %s39_s16 = sshll.u32 %s227_s1, 4  ;;  %s23_s13 = int_to_ptr.vmem [resolvable:$true] %s22_s13  ;;  %s40_s16 = int_to_ptr.hbm [resolvable:$true] %s39_s16 }
   0x4   :  { %s198_s17 = smov 128   ;;  %s199_s18 = smov 8  }
   0x5   :  { %28 = dma.hbm_to_vmem [thread:$0]  %s21_s11, 256, %s23_s13, [#allocation3], %s198_s17, %s198_s17, %s199_s18  }
   0x6   :  { %s200_s19 = smov [#allocation5]  }
   0x7   :  { %s41_s20 = sshll.u32 %s200_s19, 4  ;;  %s42_s20 = int_to_ptr.vmem [resolvable:$true] %s41_s20 }
   0x8   :  { %47 = dma.hbm_to_vmem [thread:$0]  %s40_s16, 256, %s42_s20, [#allocation6], %s198_s17, %s198_s17, %s199_s18  }
   0x9   :  { %191 = dma.done.wait [#allocation3], 256  }
   0xa   :  { %192 = vsyncadd [#allocation3], 4294967040 }
   0xb   :  { %193 = dma.done.wait [#allocation6], 256  }
   0xc   :  { %194 = vsyncadd [#allocation6], 4294967040  ;;  %v69_v0 = vld [vmem:[#allocation2] sm:$0xff]  ;;  %v70_v1 = vld [vmem:[#allocation2 + $0x8] sm:$0xff]  ;;  %s201_s0 = smov [#allocation7]   ;;  %s98_s23 = sshll.u32 %s228_s2, 4  ;;  %s99_s23 = int_to_ptr.hbm [resolvable:$true] %s98_s23 }
   0xd   :  { %v71_v2 = vld [vmem:[#allocation5] sm:$0xff]  ;;  %v72_v3 = vld [vmem:[#allocation5 + $0x8] sm:$0xff]  ;;  %s96_s1 = sshll.u32 %s201_s0, 4  ;;  %s97_s1 = int_to_ptr.vmem [resolvable:$true] %s96_s1 }
   0xe   :  { %v73_v4 = vsub.f32 %v69_v0, %v71_v2  ;;  %v74_v5 = vsub.f32 %v70_v1, %v72_v3 }
  0x10   :  { %v75_v6 = vmul.f32 0.3, %v73_v4  ;;  %v76_v7 = vmul.f32 0.3, %v74_v5 }
  0x12   :  { %v77_v8 = vsub.f32 %v75_v6, %v73_v4  ;;  %v78_v9 = vsub.f32 %v76_v7, %v74_v5 }
  0x14   :  { %v79_v10 = vmax.f32 %v75_v6, %v77_v8  ;;  %v80_v11 = vmax.f32 %v76_v7, %v78_v9 }
  0x16   :  { %v82_v12 = vadd.f32 %v80_v11, %v79_v10 }
  0x18   :  { %v89_v13 = vmul.f32 0.00048828125, %v82_v12 }
  0x1a   :  { %90 = vst [vmem:[#allocation7] sm:$0xff] %v89_v13 }
  0x1b   :  { %101 = dma.vmem_to_hbm [thread:$0]  %s97_s1, 128, %s99_s23, [#allocation4]  }
  0x1c   :  { %195 = dma.done.wait [#allocation4], 128  }
  0x1d   :  { %196 = vsyncadd [#allocation4], 4294967168 }
  0x1e   :  { %106 = vsyncpa [#allocation3], 1 }
  0x1f   :  { %107 = vsyncpa [#allocation6], 1 }
  0x20   :  { %108 = vsyncpa [#allocation4], 1 }

</bundles_post_ra>
